<compile_context>
chip_gen: v7x
topology: tpu7x:2x2x1
jax: 0.10.0
libtpu: 0.0.40
codegen_flags: <defaults>
</compile_context>

<pallas_src>
import jax
import jax.numpy as jnp
from jax.experimental import pallas as pl
from jax.experimental.pallas import tpu as pltpu


def _silu(x):
    # Exact SiLU: x * sigmoid(x) == x * 0.5 * (1 + tanh(0.5*x)).
    # Single EUP op (tanh); the mul/adds ride free VALU slots.
    return x * (0.5 * jnp.tanh(0.5 * x) + 0.5)


def vpode_kernel(scal_ref, x_ref, w1t_ref, bias1_ref, w2t_ref, b2_ref, o_ref):
    # scal_ref (SMEM): [c_drift, c_score] -- all t-dependent scalar work
    # (beta_t, alphas_t, 1/sqrt, sign flips) precomputed in the wrapper.
    c_drift = scal_ref[0]
    c_score = scal_ref[1]

    x = x_ref[...].astype(jnp.float32)                          # (BT, C, TILE_S)

    # Synthetic score model (1x1-conv MLP; time embedding folded into bias1):
    #   h     = silu(w1^T @ x + (b1 + temb))      (BT, HID, TILE_S)
    #   score = w2^T @ h + b2                     (BT, C,   TILE_S)
    h = jnp.einsum("hc,bcs->bhs", w1t_ref[...], x,
                   preferred_element_type=jnp.float32)
    h = _silu(h + bias1_ref[...][None, :, :])
    score = jnp.einsum("ch,bhs->bcs", w2t_ref[...], h,
                       preferred_element_type=jnp.float32)
    score = score + b2_ref[...][None, :, :]

    # ode_coef = drift - 0.5*diffusion**2*score'  ==  c_drift*x + c_score*score
    o_ref[...] = (c_drift * x + c_score * score).astype(o_ref.dtype)


def _vmem_budget_bytes():
    """Generation-aware scoped-VMEM limit (headroom below physical VMEM)."""
    try:
        phys = int(pltpu.get_tpu_info().vmem_capacity_bytes)
    except Exception:  # non-TPU backend / interpret mode
        phys = 128 * 1024 * 1024
    if phys <= 64 * 1024 * 1024:        # v7x: 64 MiB physical per TensorCore
        return 48 * 1024 * 1024
    return 64 * 1024 * 1024             # v5e / v6e: 128 MiB physical


def _largest_divisor_tile(extent, cap, quantum=128):
    """Largest multiple of `quantum` that divides `extent` and is <= cap;
    falls back to the full extent (e.g. extent < quantum)."""
    cap = min(extent, cap)
    cand = cap - cap % quantum
    while cand >= quantum:
        if extent % cand == 0:
            return cand
        cand -= quantum
    return extent


def _choose_tiles(B, C, S, HID, in_bytes, out_bytes, vmem_budget):
    """Pick (batch_tile, spatial_tile) sized from the VMEM budget.

    Per spatial column, per batch row, one grid step needs roughly:
      2*C*in_bytes  (double-buffered x tile) + 2*C*out_bytes (dbl-buffered out)
      + 4*(HID + 2*C)  (f32 hidden activation + score + upcast temporaries).
    """
    per_col = 2 * C * in_bytes + 2 * C * out_bytes + 4 * (HID + 2 * C)
    max_cols = max(128, int((vmem_budget // 2) // per_col))   # 2x headroom
    max_cols = min(max_cols, 32768)                           # per-step latency cap
    tile_s = _largest_divisor_tile(S, max_cols)
    n_s = S // tile_s

    # Batch tile: grow it while the step still fits the column budget and the
    # grid keeps at least a few steps (megacore / pipelining coverage).
    min_steps = min(4, B * n_s)
    bt = 1
    for cand in range(B, 0, -1):
        if B % cand:
            continue
        steps = (B // cand) * n_s
        if cand * tile_s <= max_cols and steps >= min_steps:
            bt = cand
            break
    return bt, tile_s


def vpode_forward(t, x, params, beta_min, beta_max, scale_sigma=False):
    """VPODE.forward(t, (x,)) -> (dx_dt,).  x is NCHW like the PyTorch module."""
    B, C, H, W = x.shape
    S = H * W
    HID = params["w1"].shape[1]

    # Pure reshape (NCHW is contiguous over H,W): spatial axis becomes the
    # lane axis; no transpose or dtype-cast traffic through HBM.
    x3d = x.reshape(B, C, S)

    # ---- hoisted scalar math (tiny XLA ops, once per forward call) ----
    t = jnp.asarray(t, jnp.float32)
    beta_t = beta_min + t * (beta_max - beta_min)
    c_drift = -0.5 * beta_t
    if scale_sigma:
        # alphas_t(t) = exp(-0.5*(beta_1-beta_0)*t^2 - beta_0*t)
        # NOTE: 1/sqrt(1-alpha_t) diverges as t -> 0, matching the PyTorch ref.
        alpha_t = jnp.exp(-0.5 * (beta_max - beta_min) * t * t - beta_min * t)
        # drift - 0.5*beta_t*(-score/sqrt(1-alpha_t)) = c_drift*x + c_score*score
        c_score = 0.5 * beta_t / jnp.sqrt(1.0 - alpha_t)
    else:
        c_score = -0.5 * beta_t
    scal = jnp.stack([c_drift, c_score]).astype(jnp.float32)

    # ts = t.repeat(B) -> identical per sample, so the time embedding collapses
    # to one (HID,) vector folded into the first-layer bias.
    temb = jax.nn.silu(t * params["wt"] + params["bt"])               # (1, HID)
    bias1 = (params["b1"] + temb).reshape(HID, 1).astype(jnp.float32)
    w1t = params["w1"].T.astype(jnp.float32)                          # (HID, C)
    w2t = params["w2"].T.astype(jnp.float32)                          # (C, HID)
    b2 = params["b2"].reshape(C, 1).astype(jnp.float32)               # (C, 1)

    vmem_budget = _vmem_budget_bytes()
    BT, TILE_S = _choose_tiles(
        B, C, S, HID,
        in_bytes=x.dtype.itemsize, out_bytes=x.dtype.itemsize,
        vmem_budget=vmem_budget)
    grid = (B // BT, S // TILE_S)

    out3d = pl.pallas_call(
        vpode_kernel,
        out_shape=jax.ShapeDtypeStruct((B, C, S), x.dtype),
        grid=grid,
        in_specs=[
            pl.BlockSpec(memory_space=pltpu.MemorySpace.SMEM),        # scal
            pl.BlockSpec((BT, C, TILE_S), lambda b, s: (b, 0, s)),    # x tile
            pl.BlockSpec((HID, C), lambda b, s: (0, 0)),              # w1^T (resident)
            pl.BlockSpec((HID, 1), lambda b, s: (0, 0)),              # b1 + temb
            pl.BlockSpec((C, HID), lambda b, s: (0, 0)),              # w2^T (resident)
            pl.BlockSpec((C, 1), lambda b, s: (0, 0)),                # b2
        ],
        out_specs=pl.BlockSpec((BT, C, TILE_S), lambda b, s: (b, 0, s)),
        compiler_params=pltpu.CompilerParams(
            dimension_semantics=("parallel", "parallel"),
            vmem_limit_bytes=vmem_budget,
        ),
        cost_estimate=pl.CostEstimate(
            flops=4 * B * C * HID * S,             # two (C x HID) matmuls / column
            transcendentals=B * HID * S,           # one tanh per hidden element
            bytes_accessed=2 * B * C * S * x.dtype.itemsize,
        ),
    )(scal, x3d, w1t, bias1, w2t, b2)

    return (out3d.reshape(B, C, H, W),)


def vpode_reference(t, x, params, beta_min, beta_max, scale_sigma):
    """Pure-JAX reference mirroring the PyTorch semantics (for verification)."""
    B, C, H, W = x.shape
    beta_t = beta_min + t * (beta_max - beta_min)
    x2d = jnp.transpose(x, (0, 2, 3, 1)).reshape(-1, C)
    temb = jax.nn.silu(t * params["wt"] + params["bt"])
    h = jax.nn.silu(x2d @ params["w1"] + params["b1"] + temb)
    score = h @ params["w2"] + params["b2"]
    if scale_sigma:
        alpha_t = jnp.exp(-0.5 * (beta_max - beta_min) * t ** 2 - beta_min * t)
        score = -score / jnp.sqrt(1.0 - alpha_t)
    out = -0.5 * beta_t * x2d - 0.5 * beta_t * score
    return jnp.transpose(out.reshape(B, H, W, C), (0, 3, 1, 2))


if __name__ == "__main__":
    key = jax.random.PRNGKey(0)
    B, C, H, W, HID = 2, 4, 16, 16, 32
    ks = jax.random.split(key, 8)

    x = jax.random.normal(ks[0], (B, C, H, W), jnp.float32)
    params = {
        "w1": jax.random.normal(ks[1], (C, HID), jnp.float32) * 0.2,
        "b1": jax.random.normal(ks[2], (1, HID), jnp.float32) * 0.1,
        "wt": jax.random.normal(ks[3], (1, HID), jnp.float32) * 0.5,
        "bt": jax.random.normal(ks[4], (1, HID), jnp.float32) * 0.1,
        "w2": jax.random.normal(ks[5], (HID, C), jnp.float32) * 0.2,
        "b2": jax.random.normal(ks[6], (1, C), jnp.float32) * 0.1,
    }

    t = 0.37                      # scalar t (0-dim tensor in PyTorch)
    beta_min, beta_max = 0.1, 20.0
    scale_sigma = True

    (dx_dt,) = vpode_forward(t, x, params, beta_min, beta_max, scale_sigma)
    dx_dt = jax.block_until_ready(dx_dt)

    ref = vpode_reference(jnp.float32(t), x, params, beta_min, beta_max, scale_sigma)
    assert dx_dt.shape == x.shape and dx_dt.dtype == x.dtype
    # Exact SiLU (tanh form) -> only float-rounding / EUP-ulp differences remain.
    assert jnp.allclose(dx_dt, ref, rtol=1e-3, atol=1e-3), float(
        jnp.max(jnp.abs(dx_dt - ref)))
    print("KERNEL_OK")
</pallas_src>

<mosaic_0001>
module attributes {stable_mosaic.version = 11 : i64} {
  func.func @vpode_kernel(%arg0: i32, %arg1: i32, %arg2: memref<2xf32, #tpu.memory_space<smem>>, %arg3: memref<1x4x256xf32, #tpu.memory_space<vmem>>, %arg4: memref<32x4xf32, #tpu.memory_space<vmem>>, %arg5: memref<32x1xf32, #tpu.memory_space<vmem>>, %arg6: memref<4x32xf32, #tpu.memory_space<vmem>>, %arg7: memref<4x1xf32, #tpu.memory_space<vmem>>, %arg8: memref<1x4x256xf32, #tpu.memory_space<vmem>>) attributes {dimension_semantics = [#tpu.dimension_semantics<parallel>, #tpu.dimension_semantics<parallel>], iteration_bounds = array<i64: 2, 1>, scalar_prefetch = 0 : i64, scratch_operands = 0 : i64, tpu.core_type = #tpu.core_type<tc>, window_params = [{transform_indices = @transform_0, window_bounds = array<i64: 2>}, {transform_indices = @transform_1, window_bounds = array<i64: 1, 4, 256>}, {pipeline_mode = #tpu.pipeline_mode<synchronous>, transform_indices = @transform_2, window_bounds = array<i64: 32, 4>}, {pipeline_mode = #tpu.pipeline_mode<synchronous>, transform_indices = @transform_3, window_bounds = array<i64: 32, 1>}, {pipeline_mode = #tpu.pipeline_mode<synchronous>, transform_indices = @transform_4, window_bounds = array<i64: 4, 32>}, {pipeline_mode = #tpu.pipeline_mode<synchronous>, transform_indices = @transform_5, window_bounds = array<i64: 4, 1>}, {transform_indices = @transform_6, window_bounds = array<i64: 1, 4, 256>}]} {
    %c0 = arith.constant 0 : index
    %0 = memref.load %arg2[%c0] : memref<2xf32, #tpu.memory_space<smem>>
    %c1 = arith.constant 1 : index
    %1 = memref.load %arg2[%c1] : memref<2xf32, #tpu.memory_space<smem>>
    %c0_0 = arith.constant 0 : index
    %c0_1 = arith.constant 0 : index
    %c0_2 = arith.constant 0 : index
    %2 = vector.load %arg3[%c0_0, %c0_1, %c0_2] : memref<1x4x256xf32, #tpu.memory_space<vmem>>, vector<1x4x256xf32>
    %c0_3 = arith.constant 0 : index
    %c0_4 = arith.constant 0 : index
    %3 = vector.load %arg4[%c0_3, %c0_4] : memref<32x4xf32, #tpu.memory_space<vmem>>, vector<32x4xf32>
    "tpu.trace_start"() <{level = 10 : i32, message = "hc,bcs->bhs"}> : () -> ()
    %cst = arith.constant dense<0.000000e+00> : vector<1x256x32xf32>
    %4 = tpu.matmul %2, %3, %cst {dimension_numbers = #tpu.dot_dimension_numbers<[1], [1], [0, 2], [0], [0, 0, 0, 2, 1, 0], [], []>} : vector<1x4x256xf32>, vector<32x4xf32>, vector<1x256x32xf32> -> vector<1x256x32xf32>
    %5 = tpu.transpose %4, [0, 2, 1] : vector<1x256x32xf32> -> vector<1x32x256xf32>
    "tpu.trace_stop"() : () -> ()
    %c0_5 = arith.constant 0 : index
    %c0_6 = arith.constant 0 : index
    %6 = vector.load %arg5[%c0_5, %c0_6] : memref<32x1xf32, #tpu.memory_space<vmem>>, vector<32x1xf32>
    %7 = vector.shape_cast %6 : vector<32x1xf32> to vector<1x32x1xf32>
    %8 = vector.broadcast %7 : vector<1x32x1xf32> to vector<1x32x256xf32>
    %9 = arith.addf %5, %8 : vector<1x32x256xf32>
    %cst_7 = arith.constant 5.000000e-01 : f32
    %10 = vector.broadcast %cst_7 : f32 to vector<1x32x256xf32>
    %11 = arith.mulf %10, %9 : vector<1x32x256xf32>
    %12 = math.tanh %11 : vector<1x32x256xf32>
    %cst_8 = arith.constant 5.000000e-01 : f32
    %13 = vector.broadcast %cst_8 : f32 to vector<1x32x256xf32>
    %14 = arith.mulf %13, %12 : vector<1x32x256xf32>
    %cst_9 = arith.constant 5.000000e-01 : f32
    %15 = vector.broadcast %cst_9 : f32 to vector<1x32x256xf32>
    %16 = arith.addf %14, %15 : vector<1x32x256xf32>
    %17 = arith.mulf %9, %16 : vector<1x32x256xf32>
    %c0_10 = arith.constant 0 : index
    %c0_11 = arith.constant 0 : index
    %18 = vector.load %arg6[%c0_10, %c0_11] : memref<4x32xf32, #tpu.memory_space<vmem>>, vector<4x32xf32>
    "tpu.trace_start"() <{level = 10 : i32, message = "ch,bhs->bcs"}> : () -> ()
    %cst_12 = arith.constant dense<0.000000e+00> : vector<1x256x4xf32>
    %19 = tpu.matmul %17, %18, %cst_12 {dimension_numbers = #tpu.dot_dimension_numbers<[1], [1], [0, 2], [0], [0, 0, 0, 2, 1, 0], [], []>} : vector<1x32x256xf32>, vector<4x32xf32>, vector<1x256x4xf32> -> vector<1x256x4xf32>
    %20 = tpu.transpose %19, [0, 2, 1] : vector<1x256x4xf32> -> vector<1x4x256xf32>
    "tpu.trace_stop"() : () -> ()
    %c0_13 = arith.constant 0 : index
    %c0_14 = arith.constant 0 : index
    %21 = vector.load %arg7[%c0_13, %c0_14] : memref<4x1xf32, #tpu.memory_space<vmem>>, vector<4x1xf32>
    %22 = vector.shape_cast %21 : vector<4x1xf32> to vector<1x4x1xf32>
    %23 = vector.broadcast %22 : vector<1x4x1xf32> to vector<1x4x256xf32>
    %24 = arith.addf %20, %23 : vector<1x4x256xf32>
    %25 = vector.broadcast %0 : f32 to vector<1x4x256xf32>
    %26 = arith.mulf %25, %2 : vector<1x4x256xf32>
    %27 = vector.broadcast %1 : f32 to vector<1x4x256xf32>
    %28 = arith.mulf %27, %24 : vector<1x4x256xf32>
    %29 = arith.addf %26, %28 : vector<1x4x256xf32>
    %c0_15 = arith.constant 0 : index
    %c0_16 = arith.constant 0 : index
    %c0_17 = arith.constant 0 : index
    %30 = vector.load %arg8[%c0_15, %c0_16, %c0_17] : memref<1x4x256xf32, #tpu.memory_space<vmem>>, vector<1x4x256xf32>
    tpu.vector_store %arg8[%c0_15, %c0_16, %c0_17], %29 {strides = array<i32>} : memref<1x4x256xf32, #tpu.memory_space<vmem>>, vector<1x4x256xf32>,
    return
  }
  func.func @transform_0(%arg0: i32, %arg1: i32) -> i32 {
    %c0_i32 = arith.constant 0 : i32
    %c0_i32_0 = arith.constant 0 : i32
    return %c0_i32 : i32
  }
  func.func @transform_1(%arg0: i32, %arg1: i32) -> (i32, i32, i32) {
    %c0_i32 = arith.constant 0 : i32
    %c0_i32_0 = arith.constant 0 : i32
    return %arg0, %c0_i32, %arg1 : i32, i32, i32
  }
  func.func @transform_2(%arg0: i32, %arg1: i32) -> (i32, i32) {
    %c0_i32 = arith.constant 0 : i32
    %c0_i32_0 = arith.constant 0 : i32
    %c0_i32_1 = arith.constant 0 : i32
    return %c0_i32, %c0_i32_0 : i32, i32
  }
  func.func @transform_3(%arg0: i32, %arg1: i32) -> (i32, i32) {
    %c0_i32 = arith.constant 0 : i32
    %c0_i32_0 = arith.constant 0 : i32
    %c0_i32_1 = arith.constant 0 : i32
    return %c0_i32, %c0_i32_0 : i32, i32
  }
  func.func @transform_4(%arg0: i32, %arg1: i32) -> (i32, i32) {
    %c0_i32 = arith.constant 0 : i32
    %c0_i32_0 = arith.constant 0 : i32
    %c0_i32_1 = arith.constant 0 : i32
    return %c0_i32, %c0_i32_0 : i32, i32
  }
  func.func @transform_5(%arg0: i32, %arg1: i32) -> (i32, i32) {
    %c0_i32 = arith.constant 0 : i32
    %c0_i32_0 = arith.constant 0 : i32
    %c0_i32_1 = arith.constant 0 : i32
    return %c0_i32, %c0_i32_0 : i32, i32
  }
  func.func @transform_6(%arg0: i32, %arg1: i32) -> (i32, i32, i32) {
    %c0_i32 = arith.constant 0 : i32
    %c0_i32_0 = arith.constant 0 : i32
    return %arg0, %c0_i32, %arg1 : i32, i32, i32
  }
}

</mosaic_0001>

<bundles_post_ra>
// kernel: tpu_custom_call.1
= control target key start
LH: loop header
LB: loop body
LE: loop exit
PB: predicated region body
PF: predicated region fallthrough
CT: control target
= control target key end

     0   :  { %s2636_s0 = inlined_call_operand.hbm [shape: f32[2], index: 0, kind: input, shape index: {}]   ;;  %s2637_s1 = inlined_call_operand.hbm [shape: f32[2,4,256], index: 1, kind: input, shape index: {}]   ;;  %s2638_s2 = inlined_call_operand.hbm [shape: f32[32,4], index: 2, kind: input, shape index: {}]   ;;  %s2639_s3 = inlined_call_operand.hbm [shape: f32[32,1], index: 3, kind: input, shape index: {}]   ;;  %s2640_s4 = inlined_call_operand.hbm [shape: f32[4,32], index: 4, kind: input, shape index: {}]   ;;  %s2641_s5 = inlined_call_operand.hbm [shape: f32[4,1], index: 5, kind: input, shape index: {}]   ;;  %s2642_s6 = inlined_call_operand.hbm [shape: f32[2,4,256], index: 6, kind: output, shape index: {}]  }
   0x1   :  { %2649 = sst [smem:[#allocation19_spill]] %s2636_s0 }
   0x2   :  { %11 = vsyncpa [#allocation5], 0 }
   0x3   :  { %12 = vsyncpa [#allocation3], 0 }
   0x4   :  { %14 = vsyncpa [#allocation3 + $0x1], 0 }
   0x5   :  { %15 = vsyncpa [#allocation8], 0 }
   0x6   :  { %16 = vsyncpa [#allocation11], 0 }
   0x7   :  { %17 = vsyncpa [#allocation4], 0 }
   0x8   :  { %19 = vsyncpa [#allocation4 + $0x1], 0  ;;  %s2238_s21 = smov 0   ;;  %s2240_s22 = smov 0  }
   0x9   :  { %s2242_s23 = smov 0   ;;  %s2244_s24 = smov 0  }
   0xa   :  { %s2246_s25 = smov 0   ;;  %s2248_s26 = smov 0  }
   0xb LB: > { %s2193_s27 = smov [#allocation7]   ;;  %s2643_s29 = sadd.s32 4294967295, %s2191_s26   ;;  %s2191_s26 = sphi %s2248_s26, %s25_s26   ;;  %s2187_s25 = sphi %s2246_s25, %s2672_s25   ;;  %s2183_s24 = sphi %s2244_s24, %s2671_s24   ;;  %s2179_s23 = sphi %s2242_s23, %s2670_s23   ;;  %s2175_s22 = sphi %s2240_s22, %s2669_s22   ;;  %s2171_s21 = sphi %s2238_s21, %s2668_s21  }
   0xc   : > { %s224_s28 = sshll.u32 %s2193_s27, 4  ;;  %p1524_p0 = scmp.ge.s32.totalorder %s2191_s26, 1  ;;  %s2277_s28 = int_to_ptr.vmem [resolvable:$true] %s224_s28 }
   0xd   : > { %p2272_p1 = scmp.eq.s32.totalorder %s2643_s29, 0  ;;  %p203_p2 = scmp.lt.s32.totalorder %s2191_s26, 3 }
   0xe   : > { %s2194_s8 = smov [#allocation10]   ;;  %s1942_s13 = scalar_lea.hbm %s2638_s2, 512 }
   0xf   : > { %s2650_s30 = scalar_select %p2272_p1, 1, 0 }
  0x10   : > { %p2279_p3 = pnand %p1524_p0, %p203_p2  ;;  %s251_s9 = sshll.u32 %s2194_s8, 4  ;;  %s2292_s9 = int_to_ptr.vmem [resolvable:$true] %s251_s9 }
  0x11   : > { %p1943_p7 = scmp.ne.s32.totalorder %s2638_s2, %s1942_s13  ;;  %p1949_p11 = scmp.lt.u32.totalorder %s1942_s13, %s2638_s2 }
  0x12   : > { %s2651_s7 = scalar_select %p2279_p3, 1, 0 }
  0x13   : > { %p1830_p5 = pneg %p2279_p3 }
  0x15   : > { %p2288_p6 = pnand %p1830_p5, %p2272_p1 }
  0x17   : > { %p2302_p8 = pneg %p2288_p6 }
  0x19   : > { %p1945_p9 = pnand %p2302_p8, %p1943_p7 }
  0x1b   : > { %p1946_p10 = pneg %p1945_p9 }
  0x1d   : > { %p1951_p12 = pnand %p1949_p11, %p1946_p10 }
  0x1f   : > { %1954 = shalt.err (!%p1951_p12)
}
  0x20   : > { %s1955_s19 = scalar_lea.vmem %s2277_s28, 512  ;;  %p1963_p5 = scmp.lt.s32.totalorder %s2277_s28, %s2277_s28 }
  0x21   : > { %p1956_p13 = scmp.ne.s32.totalorder %s2277_s28, %s1955_s19  ;;  %p1964_p4 = scmp.lt.s32.totalorder %s1955_s19, %s1955_s19 }
  0x23   : > { %p1958_p0 = pnand %p1956_p13, %p2302_p8  ;;  %p1965_p7 = por %p1964_p4, %p1963_p5 }
  0x25   : > { %p1959_p2 = pneg %p1958_p0 }
  0x27   : > { %p1966_p9 = pnand %p1965_p7, %p1959_p2 }
  0x29   : > { %1969 = shalt.err (!%p1966_p9)
}
  0x2a   : > { %s2644_s20 = smov 128   ;;  %s2196_s27 = smov 8  }
  0x2b   : > { %1836 = dma.hbm_to_vmem [thread:$0]  (!%p2288_p6), %s2638_s2, 512, %s2277_s28, [#allocation8], %s2644_s20, %s2644_s20, %s2196_s27  }
  0x2c   : > { %s1970_s14 = scalar_lea.hbm %s2640_s4, 64 }
  0x2d   : > { %p1971_p4 = scmp.ne.s32.totalorder %s2640_s4, %s1970_s14  ;;  %p1977_p12 = scmp.lt.u32.totalorder %s1970_s14, %s2640_s4 }
  0x2f   : > { %p1973_p10 = pnand %p1971_p4, %p2302_p8 }
  0x31   : > { %p1974_p11 = pneg %p1973_p10 }
  0x33   : > { %p1979_p13 = pnand %p1977_p12, %p1974_p11 }
  0x35   : > { %1982 = shalt.err (!%p1979_p13)
}
  0x36   : > { %s1983_s28 = scalar_lea.vmem %s2292_s9, 64  ;;  %p1991_p7 = scmp.lt.s32.totalorder %s2292_s9, %s2292_s9 }
  0x37   : > { %p1984_p0 = scmp.ne.s32.totalorder %s2292_s9, %s1983_s28  ;;  %p1992_p9 = scmp.lt.s32.totalorder %s1983_s28, %s1983_s28 }
  0x39   : > { %p1986_p2 = pnand %p1984_p0, %p2302_p8  ;;  %p1993_p4 = por %p1992_p9, %p1991_p7 }
  0x3b   : > { %p1987_p5 = pneg %p1986_p2 }
  0x3d   : > { %p1994_p10 = pnand %p1993_p4, %p1987_p5 }
  0x3f   : > { %1997 = shalt.err (!%p1994_p10)
}
  0x40   : > { %1842 = dma.hbm_to_vmem [thread:$0]  (!%p2288_p6), %s2640_s4, 64, %s2292_s9, [#allocation11]  }
  0x41   : > { %s2654_s0 = sld [smem:[#allocation19_spill]] }
  0x47   : > { %s1998_s14 = scalar_lea.hbm %s2654_s0, 16 }
  0x48   : > { %p1999_p11 = scmp.ne.s32.totalorder %s2654_s0, %s1998_s14  ;;  %p2005_p0 = scmp.lt.u32.totalorder %s1998_s14, %s2654_s0 }
  0x4a   : > { %p2001_p12 = pnand %p1999_p11, %p2302_p8 }
  0x4c   : > { %p2002_p13 = pneg %p2001_p12 }
  0x4e   : > { %p2007_p2 = pnand %p2005_p0, %p2002_p13 }
  0x50   : > { %2010 = shalt.err (!%p2007_p2)
}
  0x51   : > { %s2197_s28 = smov [#allocation2]   ;;  %s2198_s11 = smov [#allocation9]  }
  0x52   : > { %1833 = dma.hbm_to_smem (!%p2288_p6), %s2654_s0, 16, %s2197_s28, [#allocation5]  }
  0x53   : > { %s237_s12 = sshll.u32 %s2198_s11, 4  ;;  %s2199_s13 = smov [#allocation12]   ;;  %s238_s12 = int_to_ptr.vmem [resolvable:$true] %s237_s12 }
  0x54   : > { %s262_s15 = sshll.u32 %s2199_s13, 4  ;;  %s2011_s18 = scalar_lea.hbm %s2639_s3, 512  ;;  %s263_s15 = int_to_ptr.vmem [resolvable:$true] %s262_s15 }
  0x55   : > { %p2012_p5 = scmp.ne.s32.totalorder %s2639_s3, %s2011_s18  ;;  %p2018_p4 = scmp.lt.u32.totalorder %s2011_s18, %s2639_s3 }
  0x57   : > { %p2014_p7 = pnand %p2012_p5, %p2302_p8 }
  0x59   : > { %p2015_p9 = pneg %p2014_p7 }
  0x5b   : > { %p2020_p10 = pnand %p2018_p4, %p2015_p9 }
  0x5d   : > { %2023 = shalt.err (!%p2020_p10)
}
  0x5e   : > { %s2024_s28 = scalar_lea.vmem %s238_s12, 512  ;;  %p2032_p0 = scmp.lt.s32.totalorder %s238_s12, %s238_s12 }
  0x5f   : > { %p2025_p11 = scmp.ne.s32.totalorder %s238_s12, %s2024_s28  ;;  %p2033_p2 = scmp.lt.s32.totalorder %s2024_s28, %s2024_s28 }
  0x61   : > { %p2027_p12 = pnand %p2025_p11, %p2302_p8  ;;  %p2034_p3 = por %p2033_p2, %p2032_p0 }
  0x63   : > { %p2028_p13 = pneg %p2027_p12 }
  0x65   : > { %p2035_p1 = pnand %p2034_p3, %p2028_p13 }
  0x67   : > { %2038 = shalt.err (!%p2035_p1)
}
  0x68   : > { %s2655_s29 = smov 128   ;;  %s2039_s17 = scalar_lea.hbm %s2641_s5, 64 }
  0x69   : > { %1839 = dma.hbm_to_vmem [thread:$0]  (!%p2288_p6), %s2639_s3, 512, %s238_s12, [#allocation8], %s2655_s29, %s2655_s29, %s2196_s27  }
  0x6a   : > { %p2040_p3 = scmp.ne.s32.totalorder %s2641_s5, %s2039_s17  ;;  %p2046_p7 = scmp.lt.u32.totalorder %s2039_s17, %s2641_s5 }
  0x6c   : > { %p2042_p1 = pnand %p2040_p3, %p2302_p8 }
  0x6e   : > { %p2043_p5 = pneg %p2042_p1 }
  0x70   : > { %p2048_p9 = pnand %p2046_p7, %p2043_p5 }
  0x72   : > { %2051 = shalt.err (!%p2048_p9)
}
  0x73   : > { %s2052_s28 = scalar_lea.vmem %s263_s15, 64  ;;  %p2060_p12 = scmp.lt.s32.totalorder %s263_s15, %s263_s15 }
  0x74   : > { %p2053_p4 = scmp.ne.s32.totalorder %s263_s15, %s2052_s28  ;;  %p2061_p13 = scmp.lt.s32.totalorder %s2052_s28, %s2052_s28 }
  0x76   : > { %p2055_p10 = pnand %p2053_p4, %p2302_p8  ;;  %p2062_p0 = por %p2061_p13, %p2060_p12 }
  0x78   : > { %p2056_p11 = pneg %p2055_p10 }
  0x7a   : > { %p2063_p2 = pnand %p2062_p0, %p2056_p11 }
  0x7c   : > { %2066 = shalt.err (!%p2063_p2)
}
  0x7d   : > { %1845 = dma.hbm_to_vmem [thread:$0]  (!%p2288_p6), %s2641_s5, 64, %s263_s15, [#allocation11]  }
  0x7e   : > { %s1523_s16 = sadd.s32 4294967294, %s2191_s26   ;;  %s37_s29 = sadd.s32 1, %s2187_s25 }
  0x7f   : > { %s67_s10 = sadd.s32 1, %s2179_s23  ;;  %p39_p8 = scmp.ge.s32.totalorder %s37_s29, 2 }
  0x80   : > { %p74_p3 = scmp.ne.s32.totalorder %s2179_s23, %s2175_s22  ;;  %p75_p1 = scmp.eq.s32.totalorder %s2191_s26, 0 }
  0x81   : > { %p80_p5 = scmp.ne.s32.totalorder %s2175_s22, %s2171_s21  ;;  %s2674_s29 = smov (%p39_p8, %s37_s29), 0 }
  0x82   : > { %p2414_p7 = por %p75_p1, %p74_p3  ;;  %p2657_p9 = scmp.ne.s32.totalorder %s2650_s30, 0 }
  0x83   : > { %s62_s8 = ssub.s32 %s2187_s25, %s2674_s29  ;;  %s2659_s11 = sadd.s32 4294967295, %s2191_s26  }
  0x84   : > { %p2420_p6 = por %p2657_p9, %p80_p5  ;;  %p190_p4 = scmp.eq.s32.totalorder %s2659_s11, 1 }
  0x85   : > { %p65_p10 = scmp.eq.s32.totalorder %s62_s8, 0  ;;  %p196_p11 = scmp.eq.s32.totalorder %s1523_s16, 1 }
  0x86   : > { %p2428_p12 = por %p190_p4, %p74_p3  ;;  %p1859_p13 = scmp.lt.s32.totalorder %s2191_s26, 2 }
  0x87   : > { %s2434_s17 = scalar_select %p65_p10, %s2179_s23, %s67_s10  }
  0x88   : > { %s2660_s13 = scalar_select %p2428_p12, 1, 0 }
  0x89   : > { %p2436_p0 = por %p196_p11, %p80_p5  ;;  %s273_s14 = sand.u32 1, %s2179_s23  }
  0x8a   : > { %s1531_s19 = sshll.u32 %s273_s14, 3  ;;  %s1617_s9 = sshll.u32 %s2187_s25, 7 }
  0x8b   : > { %s2661_s18 = scalar_select %p2436_p0, 1, 0 }
  0x8c   : > { %s2445_s12 = scalar_lea.hbm %s2637_s1, %s1617_s9  ;;  %s277_s16 = scalar_lea.vmem [#allocation6], %s1531_s19 }
  0x8d   : > { %s287_s8 = sshll.u32 %s277_s16, 4  ;;  %p2451_p2 = pnand %p1859_p13, %p2414_p7  ;;  %s2447_s8 = int_to_ptr.vmem [resolvable:$true] %s287_s8 }
  0x8e   : > { %s274_s11 = scalar_lea.sflag [#allocation3], %s273_s14  ;;  %s2067_s0 = scalar_lea.hbm %s2445_s12, 128 }
  0x8f   : > { %p2068_p8 = scmp.ne.s32.totalorder %s2445_s12, %s2067_s0  ;;  %p2069_p3 = pneg %p2451_p2 }
  0x90   : > { %s2072_s28 = scalar_lea.hbm %s2637_s1, 256  ;;  %p2073_p7 = scmp.lt.u32.totalorder %s2445_s12, %s2637_s1 }
  0x91   : > { %p2070_p1 = pnand %p2069_p3, %p2068_p8  ;;  %p2074_p9 = scmp.lt.u32.totalorder %s2072_s28, %s2067_s0 }
  0x92   : > { %p2076_p10 = scmp.lt.u32.totalorder %s2067_s0, %s2445_s12 }
  0x93   : > { %p2071_p5 = pneg %p2070_p1  ;;  %p2075_p4 = por %p2074_p9, %p2073_p7 }
  0x95   : > { %p2077_p11 = por %p2076_p10, %p2075_p4 }
  0x97   : > { %p2078_p13 = pnand %p2077_p11, %p2071_p5 }
  0x99   : > { %2081 = shalt.err (!%p2078_p13)
}
  0x9a   : > { %s2082_s14 = scalar_lea.vmem %s2447_s8, 128  ;;  %s2200_s16 = smov [#allocation6]  }
  0x9b   : > { %p2083_p8 = scmp.ne.s32.totalorder %s2447_s8, %s2082_s14  ;;  %s2087_s19 = sshll.u32 %s2200_s16, 4  ;;  %s2088_s19 = int_to_ptr.vmem [resolvable:$false] %s2087_s19 }
  0x9c   : > { %s2089_s9 = scalar_lea.vmem %s2088_s19, 256  ;;  %p2090_p12 = scmp.lt.s32.totalorder %s2447_s8, %s2088_s19 }
  0x9d   : > { %p2085_p1 = pnand %p2083_p8, %p2069_p3  ;;  %p2091_p7 = scmp.lt.s32.totalorder %s2089_s9, %s2082_s14 }
  0x9f   : > { %p2086_p0 = pneg %p2085_p1  ;;  %p2092_p9 = por %p2091_p7, %p2090_p12 }
  0xa1   : > { %p2093_p4 = pnand %p2092_p9, %p2086_p0 }
  0xa3   : > { %2096 = shalt.err (!%p2093_p4)
}
  0xa4   : > { %1849 = dma.hbm_to_vmem [thread:$0]  (!%p2451_p2), %s2445_s12, 128, %s2447_s8, %s274_s11  }
  0xa5   : > { %p2663_p5 = scmp.ne.s32.totalorder %s2651_s7, 0 }
  0xa6   : > { %p2664_p3 = scmp.ne.s32.totalorder (!%p2663_p5), %s2650_s30, 0 }
  0xa7   : > { %296 = sbr.rel (%p2663_p5) target bundleno = 1243 (0x4db), region = 44 }
  0xae   : > { %2150 = dma.done.wait (%p2664_p3), [#allocation5], 16  }
  0xaf   : > { %2152 = vsyncadd (%p2664_p3), [#allocation5], 4294967280  ;;  %s2487_s0 = sand.u32 1, %s2175_s22  }
  0xb0   : > { %s1536_s10 = sshll.u32 %s2487_s0, 3  ;;  %s303_s28 = scalar_lea.sflag [#allocation3], %s2487_s0 }
  0xb1   : > { %s306_s12 = scalar_lea.vmem [#allocation6], %s1536_s10 }
  0xb2   : > { %2154 = dma.done.wait (%p2420_p6), %s303_s28, 128  }
  0xb3   : > { %2156 = vsyncadd (%p2420_p6), %s303_s28, 4294967168 }
  0xb4   : > { %2158 = dma.done.wait (%p2664_p3), [#allocation8], 1024  }
  0xb5   : > { %2160 = vsyncadd (%p2664_p3), [#allocation8], 4294966272 }
  0xb6   : > { %2162 = dma.done.wait (%p2664_p3), [#allocation11], 128  }
  0xb7   : > { %2164 = vsyncadd (%p2664_p3), [#allocation11], 4294967168 }
  0xb8   : > { %327 = sfence }
  0xb9   : > { %v2505_v0 = vld [vmem:[%s306_s12] sm:$0xff]  ;;  %v357_v1 = vld [vmem:[#allocation7] sm:$0xff]  ;;  %v358_v2 = vld [vmem:[#allocation7 + $0x8] sm:$0xff]  ;;  %vm428_vm0 = vcmask 31744   ;;  %v2201_v9 = vmov 0   ;;  %vm963_vm2 = vcmask 261120  }
  0xba   : > { %364 = vxpose.xlu0.b32.start.end [1/1] (short) %v2505_v0, 128  ;;  %v1794_v3 = vpack.c.bf16 %v358_v2, %v357_v1  ;;  %v359_v4 = vld [vmem:[#allocation7 + $0x10] sm:$0xff]  ;;  %v360_v5 = vld [vmem:[#allocation7 + $0x18] sm:$0xff]  ;;  %vm1795_vm1 = vmpackc.low %vm428_vm0, %vm428_vm0  ;;  %v362_v7 = vcombine.high %v2505_v0, %v2505_v0  ;;  %1923 = vset.pattern.permute.xlu1 %v2201_v9  ;;  %s354_s30 = sld [smem:[#allocation2]]  ;;  %s1542_s7 = sld [smem:[#allocation2 + $0x1]] }
  0xbb   : > { %v1800_v6 = vpack.c.bf16 %v360_v5, %v359_v4  ;;  %v826_v8 = vld [vmem:[#allocation9] sm:$0xff]  ;;  %v827_v11 = vld [vmem:[#allocation9 + $0x8] sm:$0xff]  ;;  %v828_v13 = vld [vmem:[#allocation9 + $0x10] sm:$0xff]  ;;  %s1618_s15 = sshll.u32 %s2183_s24, 7  ;;  %s351_s8 = scalar_lea.vmem [#allocation13], %s1536_s10 }
  0xbc   : > { %1796 = vmatprep.subr.msk.bf16.mxu0 %vm1795_vm1, %v1794_v3  ;;  %832 = vperm.xlu1 %1923, %v826_v8   ;;  %v829_v15 = vld [vmem:[#allocation9 + $0x18] sm:$0xff]  ;;  %s1388_s11 = sshll.u32 %s351_s8, 4  ;;  %s2587_s14 = scalar_lea.hbm %s2642_s6, %s1618_s15  ;;  %s2589_s11 = int_to_ptr.vmem [resolvable:$true] %s1388_s11 }
  0xbd   : > { %1799 = vmatpush3.bf16.xpose.msk.msra.mxu0 %vm1795_vm1, %v1794_v3  ;;  %s1372_s16 = scalar_lea.sflag [#allocation4], %s2487_s0  ;;  %s2097_s19 = scalar_lea.vmem %s2589_s11, 128 }
  0xbe   : > { %1802 = vmatprep.subr.msk.bf16.mxu0 %vm1795_vm1, %v1800_v6  ;;  %p2098_p6 = scmp.ne.s32.totalorder %s2589_s11, %s2097_s19  ;;  %p2665_p12 = scmp.ne.s32.totalorder %s2660_s13, 0 }
  0xbf   : > { %s2202_s24 = smov [#allocation13]  }
  0xc0   : > { %837 = vperm.xlu1 %1923, %v827_v11   ;;  %p2099_p0 = pnand %p2098_p6, %p2665_p12  ;;  %s2101_s9 = sshll.u32 %s2202_s24, 4  ;;  %s2102_s9 = int_to_ptr.vmem [resolvable:$false] %s2101_s9 }
  0xc1   : > { %s2103_s10 = scalar_lea.vmem %s2102_s9, 256  ;;  %p2104_p10 = scmp.lt.s32.totalorder %s2589_s11, %s2102_s9 }
  0xc2   : > { %p2100_p2 = pneg %p2099_p0  ;;  %p2105_p11 = scmp.lt.s32.totalorder %s2103_s10, %s2097_s19 }
  0xc4   : > { %842 = vperm.xlu1 %1923, %v828_v13   ;;  %p2106_p13 = por %p2105_p11, %p2104_p10 }
  0xc5   : > { %1805 = vmatpush3.bf16.xpose.msk.msra.mxu0 %vm1795_vm1, %v1800_v6 }
  0xc6   : > { %p2107_p8 = pnand %p2106_p13, %p2100_p2 }
  0xc8   : > { %847 = vperm.xlu1 %1923, %v829_v15  }
  0xf7   : > { %396 = vxpose.xlu0.b32.start.end [1/1] (short) %v362_v7, 128 }
 0x13a   : > { %v380_v10 = vpop.trf.xlu0 }
 0x13b   : > { %1696 = vmatprep.mubr.msk.f32.mxu0 %vm428_vm0, %v380_v10  ;;  %v833_v11 = vpop.permute.xlu1 %832 }
 0x13e   : > { %v381_v12 = vpop.trf.xlu0 }
 0x13f   : > { %1697 = vmatmul.mubr.msk.f32.vlgmr.msra.gmra.mrb[0].mxu0 %vm428_vm0, %v381_v12 }
 0x142   : > { %v382_v14 = vpop.trf.xlu0 }
 0x143   : > { %1699 = vmatprep.mubr.msk.f32.mxu0 %vm428_vm0, %v382_v14  ;;  %v838_v14 = vpop.permute.xlu1 %837 }
 0x146   : > { %v383_v16 = vpop.trf.xlu0 }
 0x147   : > { %1700 = vmatmul.mubr.msk.f32.gmra.mrb[2].mxu0 %vm428_vm0, %v383_v16  ;;  %v843_v15 = vpop.permute.xlu1 %842 }
 0x14a   : > { %v384_v17 = vpop.trf.xlu0 }
 0x14b   : > { %1702 = vmatprep.mubr.msk.f32.mxu0 %vm428_vm0, %v384_v17 }
 0x14e   : > { %v385_v18 = vpop.trf.xlu0 }
 0x14f   : > { %1703 = vmatmul.mubr.msk.f32.gmra.mrb[4].mxu0 %vm428_vm0, %v385_v18  ;;  %v848_v18 = vpop.permute.xlu1 %847 }
 0x152   : > { %v386_v19 = vpop.trf.xlu0 }
 0x153   : > { %1705 = vmatprep.mubr.msk.f32.mxu0 %vm428_vm0, %v386_v19 }
 0x156   : > { %v387_v20 = vpop.trf.xlu0 }
 0x157   : > { %1706 = vmatmul.mubr.msk.f32.gmra.mrb[6].mxu0 %vm428_vm0, %v387_v20 }
 0x15a   : > { %v388_v21 = vpop.trf.xlu0 }
 0x15b   : > { %1708 = vmatprep.mubr.msk.f32.mxu0 %vm428_vm0, %v388_v21 }
 0x15e   : > { %v389_v22 = vpop.trf.xlu0 }
 0x15f   : > { %1709 = vmatmul.mubr.msk.f32.gmra.mrb[8].mxu0 %vm428_vm0, %v389_v22 }
 0x162   : > { %v390_v23 = vpop.trf.xlu0 }
 0x163   : > { %1711 = vmatprep.mubr.msk.f32.mxu0 %vm428_vm0, %v390_v23 }
 0x166   : > { %v391_v24 = vpop.trf.xlu0 }
 0x167   : > { %1712 = vmatmul.mubr.msk.f32.gmra.mrb[10].mxu0 %vm428_vm0, %v391_v24 }
 0x16a   : > { %v392_v25 = vpop.trf.xlu0 }
 0x16b   : > { %1714 = vmatprep.mubr.msk.f32.mxu0 %vm428_vm0, %v392_v25 }
 0x16e   : > { %v393_v26 = vpop.trf.xlu0 }
 0x16f   : > { %1715 = vmatmul.mubr.msk.f32.gmra.mrb[12].mxu0 %vm428_vm0, %v393_v26 }
 0x172   : > { %v394_v27 = vpop.trf.xlu0 }
 0x173   : > { %1717 = vmatprep.mubr.msk.f32.mxu0 %vm428_vm0, %v394_v27 }
 0x176   : > { %v395_v28 = vpop.trf.xlu0 }
 0x177   : > { %1718 = vmatmul.mubr.msk.f32.gmra.mrb[14].mxu0 %vm428_vm0, %v395_v28 }
 0x17a   : > { %v412_v29 = vpop.trf.xlu0 }
 0x17b   : > { %1720 = vmatprep.mubr.msk.f32.mxu0 %vm428_vm0, %v412_v29 }
 0x17e   : > { %v413_v30 = vpop.trf.xlu0 }
 0x17f   : > { %1721 = vmatmul.mubr.msk.f32.gmra.mrb[16].mxu0 %vm428_vm0, %v413_v30 }
 0x182   : > { %v414_v31 = vpop.trf.xlu0 }
 0x183   : > { %1723 = vmatprep.mubr.msk.f32.mxu0 %vm428_vm0, %v414_v31 }
 0x186   : > { %v415_v32 = vpop.trf.xlu0 }
 0x187   : > { %1724 = vmatmul.mubr.msk.f32.gmra.mrb[18].mxu0 %vm428_vm0, %v415_v32 }
 0x18a   : > { %v416_v33 = vpop.trf.xlu0 }
 0x18b   : > { %1726 = vmatprep.mubr.msk.f32.mxu0 %vm428_vm0, %v416_v33 }
 0x18e   : > { %v417_v34 = vpop.trf.xlu0 }
 0x18f   : > { %1727 = vmatmul.mubr.msk.f32.gmra.mrb[20].mxu0 %vm428_vm0, %v417_v34 }
 0x192   : > { %v418_v35 = vpop.trf.xlu0 }
 0x193   : > { %1729 = vmatprep.mubr.msk.f32.mxu0 %vm428_vm0, %v418_v35 }
 0x196   : > { %v419_v36 = vpop.trf.xlu0 }
 0x197   : > { %1730 = vmatmul.mubr.msk.f32.gmra.mrb[22].mxu0 %vm428_vm0, %v419_v36 }
 0x19a   : > { %v420_v37 = vpop.trf.xlu0 }
 0x19b   : > { %1732 = vmatprep.mubr.msk.f32.mxu0 %vm428_vm0, %v420_v37 }
 0x19e   : > { %v421_v38 = vpop.trf.xlu0 }
 0x19f   : > { %1733 = vmatmul.mubr.msk.f32.gmra.mrb[24].mxu0 %vm428_vm0, %v421_v38  ;;  %v898_v38 = vld [vmem:[#allocation10] sm:$0xf] }
 0x1a0   : > { %1744 = vmatprep.subr.msk.mxu1 %vm963_vm2, %v898_v38 }
 0x1a1   : > { %1745 = vmatpush3.xpose.msk.msra.mxu1 %vm963_vm2, %v898_v38 }
 0x1a2   : > { %v422_v39 = vpop.trf.xlu0 }
 0x1a3   : > { %1735 = vmatprep.mubr.msk.f32.mxu0 %vm428_vm0, %v422_v39 }
 0x1a6   : > { %v423_v40 = vpop.trf.xlu0 }
 0x1a7   : > { %1736 = vmatmul.mubr.msk.f32.gmra.mrb[26].mxu0 %vm428_vm0, %v423_v40 }
 0x1aa   : > { %v424_v41 = vpop.trf.xlu0 }
 0x1ab   : > { %1738 = vmatprep.mubr.msk.f32.mxu0 %vm428_vm0, %v424_v41 }
 0x1ae   : > { %v425_v42 = vpop.trf.xlu0 }
 0x1af   : > { %1739 = vmatmul.mubr.msk.f32.gmra.mrb[28].mxu0 %vm428_vm0, %v425_v42 }
 0x1b2   : > { %v426_v43 = vpop.trf.xlu0 }
 0x1b3   : > { %1741 = vmatprep.mubr.msk.f32.mxu0 %vm428_vm0, %v426_v43 }
 0x1b6   : > { %v427_v44 = vpop.trf.xlu0 }
 0x1b7   : > { %1742 = vmatmul.mubr.msk.f32.gmra.mrb[30].mxu0 %vm428_vm0, %v427_v44 }
 0x212   : > { %v1698_v45 = vpop.f32.mrb[0].mxu0 }
 0x213   : > { %v603_v46 = vpop.f32.mrb[1].mxu0 }
 0x214   : > { %762 = vxpose.xlu1.b32.start [1/16] (narrow) %v603_v46, 32 }
 0x218   : > { %763 = vxpose.xlu1.b32.cont [2/16] (narrow) %v1698_v45, 32 }
 0x21a   : > { %v1701_v47 = vpop.f32.mrb[2].mxu0 }
 0x21b   : > { %v613_v48 = vpop.f32.mrb[3].mxu0 }
 0x21c   : > { %764 = vxpose.xlu1.b32.cont [3/16] (narrow) %v613_v48, 32 }
 0x220   : > { %765 = vxpose.xlu1.b32.cont [4/16] (narrow) %v1701_v47, 32 }
 0x222   : > { %v1704_v49 = vpop.f32.mrb[4].mxu0 }
 0x223   : > { %v623_v50 = vpop.f32.mrb[5].mxu0 }
 0x224   : > { %766 = vxpose.xlu1.b32.cont [5/16] (narrow) %v623_v50, 32 }
 0x228   : > { %767 = vxpose.xlu1.b32.cont [6/16] (narrow) %v1704_v49, 32 }
 0x22a   : > { %v1707_v51 = vpop.f32.mrb[6].mxu0 }
 0x22b   : > { %v633_v52 = vpop.f32.mrb[7].mxu0 }
 0x22c   : > { %768 = vxpose.xlu1.b32.cont [7/16] (narrow) %v633_v52, 32 }
 0x230   : > { %769 = vxpose.xlu1.b32.cont [8/16] (narrow) %v1707_v51, 32 }
 0x232   : > { %v1710_v53 = vpop.f32.mrb[8].mxu0 }
 0x233   : > { %v643_v54 = vpop.f32.mrb[9].mxu0 }
 0x234   : > { %770 = vxpose.xlu1.b32.cont [9/16] (narrow) %v643_v54, 32 }
 0x238   : > { %771 = vxpose.xlu1.b32.cont [10/16] (narrow) %v1710_v53, 32 }
 0x23a   : > { %v1713_v55 = vpop.f32.mrb[10].mxu0 }
 0x23b   : > { %v653_v56 = vpop.f32.mrb[11].mxu0 }
 0x23c   : > { %772 = vxpose.xlu1.b32.cont [11/16] (narrow) %v653_v56, 32 }
 0x240   : > { %773 = vxpose.xlu1.b32.cont [12/16] (narrow) %v1713_v55, 32 }
 0x242   : > { %v1716_v57 = vpop.f32.mrb[12].mxu0 }
 0x243   : > { %v663_v58 = vpop.f32.mrb[13].mxu0 }
 0x244   : > { %774 = vxpose.xlu1.b32.cont [13/16] (narrow) %v663_v58, 32 }
 0x248   : > { %775 = vxpose.xlu1.b32.cont [14/16] (narrow) %v1716_v57, 32 }
 0x24a   : > { %v1719_v59 = vpop.f32.mrb[14].mxu0 }
 0x24b   : > { %v673_v60 = vpop.f32.mrb[15].mxu0 }
 0x24c   : > { %776 = vxpose.xlu1.b32.cont [15/16] (narrow) %v673_v60, 32 }
 0x250   : > { %777 = vxpose.xlu1.b32.end [16/16] (narrow) %v1719_v59, 32 }
 0x252   : > { %v1722_v61 = vpop.f32.mrb[16].mxu0 }
 0x253   : > { %v683_v62 = vpop.f32.mrb[17].mxu0 }
 0x254   : > { %794 = vxpose.xlu0.b32.start [1/16] (narrow) %v683_v62, 32 }
 0x258   : > { %795 = vxpose.xlu0.b32.cont [2/16] (narrow) %v1722_v61, 32 }
 0x25a   : > { %v1725_v63 = vpop.f32.mrb[18].mxu0 }
 0x25b   : > { %v693_v1 = vpop.f32.mrb[19].mxu0 }
 0x25c   : > { %796 = vxpose.xlu0.b32.cont [3/16] (narrow) %v693_v1, 32 }
 0x260   : > { %797 = vxpose.xlu0.b32.cont [4/16] (narrow) %v1725_v63, 32 }
 0x262   : > { %v1728_v2 = vpop.f32.mrb[20].mxu0 }
 0x263   : > { %v703_v3 = vpop.f32.mrb[21].mxu0 }
 0x264   : > { %798 = vxpose.xlu0.b32.cont [5/16] (narrow) %v703_v3, 32 }
 0x268   : > { %799 = vxpose.xlu0.b32.cont [6/16] (narrow) %v1728_v2, 32 }
 0x26a   : > { %v1731_v4 = vpop.f32.mrb[22].mxu0 }
 0x26b   : > { %v713_v5 = vpop.f32.mrb[23].mxu0 }
 0x26c   : > { %800 = vxpose.xlu0.b32.cont [7/16] (narrow) %v713_v5, 32 }
 0x270   : > { %801 = vxpose.xlu0.b32.cont [8/16] (narrow) %v1731_v4, 32 }
 0x272   : > { %v1734_v6 = vpop.f32.mrb[24].mxu0 }
 0x273   : > { %v723_v7 = vpop.f32.mrb[25].mxu0 }
 0x274   : > { %802 = vxpose.xlu0.b32.cont [9/16] (narrow) %v723_v7, 32 }
 0x278   : > { %803 = vxpose.xlu0.b32.cont [10/16] (narrow) %v1734_v6, 32 }
 0x27a   : > { %v1737_v8 = vpop.f32.mrb[26].mxu0 }
 0x27b   : > { %v733_v10 = vpop.f32.mrb[27].mxu0 }
 0x27c   : > { %804 = vxpose.xlu0.b32.cont [11/16] (narrow) %v733_v10, 32 }
 0x280   : > { %805 = vxpose.xlu0.b32.cont [12/16] (narrow) %v1737_v8, 32 }
 0x282   : > { %v1740_v12 = vpop.f32.mrb[28].mxu0 }
 0x283   : > { %v743_v13 = vpop.f32.mrb[29].mxu0 }
 0x284   : > { %806 = vxpose.xlu0.b32.cont [13/16] (narrow) %v743_v13, 32 }
 0x288   : > { %807 = vxpose.xlu0.b32.cont [14/16] (narrow) %v1740_v12, 32 }
 0x28a   : > { %v1743_v16 = vpop.f32.mrb[30].mxu0 }
 0x28b   : > { %v753_v17 = vpop.f32.mrb[31].mxu0 }
 0x28c   : > { %808 = vxpose.xlu0.b32.cont [15/16] (narrow) %v753_v17, 32 }
 0x290   : > { %809 = vxpose.xlu0.b32.end [16/16] (narrow) %v1743_v16, 32 }
 0x294   : > { %v778_v19 = vpop.trf.xlu1 }
 0x295   : > { %v850_v20 = vadd.f32 %v833_v11, %v778_v19 }
 0x297   : > { %v858_v21 = vmul.f32 0.5, %v850_v20 }
 0x298   : > { %v779_v22 = vpop.trf.xlu1 }
 0x299   : > { %1926 = vtanh.f32 %v858_v21  ;;  %v852_v23 = vadd.f32 %v838_v14, %v779_v22 }
 0x29b   : > { %v860_v24 = vmul.f32 0.5, %v852_v23 }
 0x29c   : > { %v780_v25 = vpop.trf.xlu1 }
 0x29d   : > { %1928 = vtanh.f32 %v860_v24  ;;  %v854_v26 = vadd.f32 %v843_v15, %v780_v25 }
 0x29f   : > { %v862_v27 = vmul.f32 0.5, %v854_v26 }
 0x2a0   : > { %v781_v28 = vpop.trf.xlu1 }
 0x2a1   : > { %1930 = vtanh.f32 %v862_v27  ;;  %v856_v29 = vadd.f32 %v848_v18, %v781_v28 }
 0x2a3   : > { %v1927_v30 = vpop.eup %1926  ;;  %v864_v31 = vmul.f32 0.5, %v856_v29 }
 0x2a4   : > { %v874_v32 = vmul.f32 0.5, %v1927_v30 }
 0x2a5   : > { %1932 = vtanh.f32 %v864_v31 }
 0x2a6   : > { %v882_v33 = vadd.f32 0.5, %v874_v32 }
 0x2a7   : > { %v1929_v34 = vpop.eup %1928 }
 0x2a8   : > { %v890_v35 = vmul.f32 %v882_v33, %v850_v20  ;;  %v876_v36 = vmul.f32 0.5, %v1929_v34  ;;  %v1352_v20 = vld [vmem:[#allocation12] sm:$0xf] }
 0x2aa   : > { %v884_v37 = vadd.f32 0.5, %v876_v36  ;;  %899 = vxpose.xlu1.b32.start [1/4] (short) %v890_v35, 128 }
 0x2ab   : > { %v1931_v39 = vpop.eup %1930 }
 0x2ac   : > { %v892_v40 = vmul.f32 %v884_v37, %v852_v23  ;;  %v878_v41 = vmul.f32 0.5, %v1931_v39 }
 0x2ae   : > { %v886_v42 = vadd.f32 0.5, %v878_v41  ;;  %900 = vxpose.xlu1.b32.cont [2/4] (short) %v892_v40, 128 }
 0x2af   : > { %v1933_v43 = vpop.eup %1932 }
 0x2b0   : > { %v894_v44 = vmul.f32 %v886_v42, %v854_v26  ;;  %v880_v45 = vmul.f32 0.5, %v1933_v43 }
 0x2b2   : > { %v888_v46 = vadd.f32 0.5, %v880_v45  ;;  %901 = vxpose.xlu1.b32.cont [3/4] (short) %v894_v44, 128 }
 0x2b4   : > { %v896_v47 = vmul.f32 %v888_v46, %v856_v29 }
 0x2b6   : > { %902 = vxpose.xlu1.b32.end [4/4] (short) %v896_v47, 128 }
 0x2d4   : > { %v810_v48 = vpop.trf.xlu0 }
 0x2d5   : > { %v851_v49 = vadd.f32 %v833_v11, %v810_v48 }
 0x2d7   : > { %v859_v50 = vmul.f32 0.5, %v851_v49 }
 0x2d8   : > { %v811_v51 = vpop.trf.xlu0 }
 0x2d9   : > { %1934 = vtanh.f32 %v859_v50  ;;  %v853_v52 = vadd.f32 %v838_v14, %v811_v51 }
 0x2db   : > { %v861_v53 = vmul.f32 0.5, %v853_v52 }
 0x2dc   : > { %v812_v54 = vpop.trf.xlu0 }
 0x2dd   : > { %1936 = vtanh.f32 %v861_v53  ;;  %v855_v55 = vadd.f32 %v843_v15, %v812_v54 }
 0x2df   : > { %v863_v56 = vmul.f32 0.5, %v855_v55 }
 0x2e0   : > { %v813_v57 = vpop.trf.xlu0 }
 0x2e1   : > { %1938 = vtanh.f32 %v863_v56  ;;  %v857_v58 = vadd.f32 %v848_v18, %v813_v57 }
 0x2e3   : > { %v1935_v59 = vpop.eup %1934  ;;  %v865_v60 = vmul.f32 0.5, %v857_v58 }
 0x2e4   : > { %v875_v61 = vmul.f32 0.5, %v1935_v59 }
 0x2e5   : > { %1940 = vtanh.f32 %v865_v60 }
 0x2e6   : > { %v883_v62 = vadd.f32 0.5, %v875_v61 }
 0x2e7   : > { %v1937_v63 = vpop.eup %1936 }
 0x2e8   : > { %v891_v1 = vmul.f32 %v883_v62, %v851_v49  ;;  %v877_v2 = vmul.f32 0.5, %v1937_v63 }
 0x2ea   : > { %v885_v3 = vadd.f32 0.5, %v877_v2  ;;  %931 = vxpose.xlu1.b32.start [1/4] (short) %v891_v1, 128 }
 0x2eb   : > { %v1939_v4 = vpop.eup %1938 }
 0x2ec   : > { %v893_v5 = vmul.f32 %v885_v3, %v853_v52  ;;  %v879_v6 = vmul.f32 0.5, %v1939_v4 }
 0x2ee   : > { %v887_v7 = vadd.f32 0.5, %v879_v6  ;;  %932 = vxpose.xlu1.b32.cont [2/4] (short) %v893_v5, 128 }
 0x2ef   : > { %v1941_v8 = vpop.eup %1940 }
 0x2f0   : > { %v895_v10 = vmul.f32 %v887_v7, %v855_v55  ;;  %v881_v11 = vmul.f32 0.5, %v1941_v8 }
 0x2f2   : > { %v889_v12 = vadd.f32 0.5, %v881_v11  ;;  %933 = vxpose.xlu1.b32.cont [3/4] (short) %v895_v10, 128 }
 0x2f4   : > { %v897_v13 = vmul.f32 %v889_v12, %v857_v58 }
 0x2f6   : > { %934 = vxpose.xlu1.b32.end [4/4] (short) %v897_v13, 128 }
 0x32a   : > { %v915_v14 = vpop.trf.xlu1 }
 0x32b   : > { %1746 = vmatprep.mubr.msk.f32.mxu1 %vm963_vm2, %v915_v14 }
 0x32e   : > { %v916_v15 = vpop.trf.xlu1 }
 0x32f   : > { %1747 = vmatmul.mubr.msk.f32.vlgmr.msra.gmra.mrb[0].mxu1 %vm963_vm2, %v916_v15 }
 0x332   : > { %v917_v16 = vpop.trf.xlu1 }
 0x333   : > { %1749 = vmatprep.mubr.msk.f32.mxu1 %vm963_vm2, %v917_v16 }
 0x336   : > { %v918_v17 = vpop.trf.xlu1 }
 0x337   : > { %1750 = vmatmul.mubr.msk.f32.gmra.mrb[2].mxu1 %vm963_vm2, %v918_v17 }
 0x33a   : > { %v919_v18 = vpop.trf.xlu1 }
 0x33b   : > { %1752 = vmatprep.mubr.msk.f32.mxu1 %vm963_vm2, %v919_v18 }
 0x33e   : > { %v920_v19 = vpop.trf.xlu1 }
 0x33f   : > { %1753 = vmatmul.mubr.msk.f32.gmra.mrb[4].mxu1 %vm963_vm2, %v920_v19 }
 0x342   : > { %v921_v21 = vpop.trf.xlu1 }
 0x343   : > { %1755 = vmatprep.mubr.msk.f32.mxu1 %vm963_vm2, %v921_v21  ;;  %v1362_v21 = vstv %s1542_s7 }
 0x344   : > { %1355 = vperm.xlu1 %1923, %v1352_v20   ;;  %v1360_v20 = vstv %s354_s30 }
 0x346   : > { %v922_v22 = vpop.trf.xlu1 }
 0x347   : > { %1756 = vmatmul.mubr.msk.f32.gmra.mrb[6].mxu1 %vm963_vm2, %v922_v22 }
 0x34a   : > { %v923_v23 = vpop.trf.xlu1 }
 0x34b   : > { %1758 = vmatprep.mubr.msk.f32.mxu1 %vm963_vm2, %v923_v23 }
 0x34e   : > { %v924_v24 = vpop.trf.xlu1 }
 0x34f   : > { %1759 = vmatmul.mubr.msk.f32.gmra.mrb[8].mxu1 %vm963_vm2, %v924_v24  ;;  %v1361_v24 = vmul.f32 %v1360_v20, %v2505_v0 }
 0x352   : > { %v925_v25 = vpop.trf.xlu1 }
 0x353   : > { %1761 = vmatprep.mubr.msk.f32.mxu1 %vm963_vm2, %v925_v25 }
 0x356   : > { %v926_v26 = vpop.trf.xlu1 }
 0x357   : > { %1762 = vmatmul.mubr.msk.f32.gmra.mrb[10].mxu1 %vm963_vm2, %v926_v26 }
 0x35a   : > { %v927_v27 = vpop.trf.xlu1 }
 0x35b   : > { %1764 = vmatprep.mubr.msk.f32.mxu1 %vm963_vm2, %v927_v27 }
 0x35e   : > { %v928_v28 = vpop.trf.xlu1 }
 0x35f   : > { %1765 = vmatmul.mubr.msk.f32.gmra.mrb[12].mxu1 %vm963_vm2, %v928_v28 }
 0x362   : > { %v929_v29 = vpop.trf.xlu1 }
 0x363   : > { %1767 = vmatprep.mubr.msk.f32.mxu1 %vm963_vm2, %v929_v29 }
 0x366   : > { %v930_v30 = vpop.trf.xlu1 }
 0x367   : > { %1768 = vmatmul.mubr.msk.f32.gmra.mrb[14].mxu1 %vm963_vm2, %v930_v30 }
 0x36a   : > { %v947_v31 = vpop.trf.xlu1 }
 0x36b   : > { %1770 = vmatprep.mubr.msk.f32.mxu1 %vm963_vm2, %v947_v31 }
 0x36e   : > { %v948_v32 = vpop.trf.xlu1 }
 0x36f   : > { %1771 = vmatmul.mubr.msk.f32.gmra.mrb[16].mxu1 %vm963_vm2, %v948_v32 }
 0x372   : > { %v949_v33 = vpop.trf.xlu1 }
 0x373   : > { %1773 = vmatprep.mubr.msk.f32.mxu1 %vm963_vm2, %v949_v33 }
 0x376   : > { %v950_v34 = vpop.trf.xlu1 }
 0x377   : > { %1774 = vmatmul.mubr.msk.f32.gmra.mrb[18].mxu1 %vm963_vm2, %v950_v34 }
 0x37a   : > { %v951_v35 = vpop.trf.xlu1 }
 0x37b   : > { %1776 = vmatprep.mubr.msk.f32.mxu1 %vm963_vm2, %v951_v35 }
 0x37e   : > { %v952_v36 = vpop.trf.xlu1 }
 0x37f   : > { %1777 = vmatmul.mubr.msk.f32.gmra.mrb[20].mxu1 %vm963_vm2, %v952_v36 }
 0x382   : > { %v953_v37 = vpop.trf.xlu1 }
 0x383   : > { %1779 = vmatprep.mubr.msk.f32.mxu1 %vm963_vm2, %v953_v37 }
 0x386   : > { %v954_v38 = vpop.trf.xlu1 }
 0x387   : > { %1780 = vmatmul.mubr.msk.f32.gmra.mrb[22].mxu1 %vm963_vm2, %v954_v38 }
 0x38a   : > { %v955_v39 = vpop.trf.xlu1 }
 0x38b   : > { %1782 = vmatprep.mubr.msk.f32.mxu1 %vm963_vm2, %v955_v39 }
 0x38e   : > { %v956_v40 = vpop.trf.xlu1 }
 0x38f   : > { %1783 = vmatmul.mubr.msk.f32.gmra.mrb[24].mxu1 %vm963_vm2, %v956_v40 }
 0x392   : > { %v957_v41 = vpop.trf.xlu1 }
 0x393   : > { %1785 = vmatprep.mubr.msk.f32.mxu1 %vm963_vm2, %v957_v41 }
 0x396   : > { %v958_v42 = vpop.trf.xlu1 }
 0x397   : > { %1786 = vmatmul.mubr.msk.f32.gmra.mrb[26].mxu1 %vm963_vm2, %v958_v42 }
 0x39a   : > { %v959_v43 = vpop.trf.xlu1 }
 0x39b   : > { %1788 = vmatprep.mubr.msk.f32.mxu1 %vm963_vm2, %v959_v43 }
 0x39e   : > { %v960_v44 = vpop.trf.xlu1 }
 0x39f   : > { %1789 = vmatmul.mubr.msk.f32.gmra.mrb[28].mxu1 %vm963_vm2, %v960_v44 }
 0x3a2   : > { %v961_v45 = vpop.trf.xlu1 }
 0x3a3   : > { %1791 = vmatprep.mubr.msk.f32.mxu1 %vm963_vm2, %v961_v45 }
 0x3a6   : > { %v962_v46 = vpop.trf.xlu1 }
 0x3a7   : > { %1792 = vmatmul.mubr.msk.f32.gmra.mrb[30].mxu1 %vm963_vm2, %v962_v46 }
 0x3c3   : > { %v1356_v18 = vpop.permute.xlu1 %1355 }
 0x402   : > { %v1748_v47 = vpop.f32.mrb[0].mxu1 }
 0x403   : > { %v1129_v48 = vpop.f32.mrb[1].mxu1 }
 0x404   : > { %1288 = vxpose.xlu0.b32.start [1/16] (narrow) %v1129_v48, 8 }
 0x408   : > { %1289 = vxpose.xlu0.b32.cont [2/16] (narrow) %v1748_v47, 8 }
 0x40a   : > { %v1751_v49 = vpop.f32.mrb[2].mxu1 }
 0x40b   : > { %v1139_v50 = vpop.f32.mrb[3].mxu1 }
 0x40c   : > { %1290 = vxpose.xlu0.b32.cont [3/16] (narrow) %v1139_v50, 8 }
 0x410   : > { %1291 = vxpose.xlu0.b32.cont [4/16] (narrow) %v1751_v49, 8 }
 0x412   : > { %v1754_v51 = vpop.f32.mrb[4].mxu1 }
 0x413   : > { %v1149_v52 = vpop.f32.mrb[5].mxu1 }
 0x414   : > { %1292 = vxpose.xlu0.b32.cont [5/16] (narrow) %v1149_v52, 8 }
 0x418   : > { %1293 = vxpose.xlu0.b32.cont [6/16] (narrow) %v1754_v51, 8 }
 0x41a   : > { %v1757_v53 = vpop.f32.mrb[6].mxu1 }
 0x41b   : > { %v1159_v54 = vpop.f32.mrb[7].mxu1 }
 0x41c   : > { %1294 = vxpose.xlu0.b32.cont [7/16] (narrow) %v1159_v54, 8 }
 0x420   : > { %1295 = vxpose.xlu0.b32.cont [8/16] (narrow) %v1757_v53, 8 }
 0x422   : > { %v1760_v55 = vpop.f32.mrb[8].mxu1 }
 0x423   : > { %v1169_v56 = vpop.f32.mrb[9].mxu1 }
 0x424   : > { %1296 = vxpose.xlu0.b32.cont [9/16] (narrow) %v1169_v56, 8 }
 0x428   : > { %1297 = vxpose.xlu0.b32.cont [10/16] (narrow) %v1760_v55, 8 }
 0x42a   : > { %v1763_v57 = vpop.f32.mrb[10].mxu1 }
 0x42b   : > { %v1179_v58 = vpop.f32.mrb[11].mxu1 }
 0x42c   : > { %1298 = vxpose.xlu0.b32.cont [11/16] (narrow) %v1179_v58, 8 }
 0x430   : > { %1299 = vxpose.xlu0.b32.cont [12/16] (narrow) %v1763_v57, 8 }
 0x432   : > { %v1766_v59 = vpop.f32.mrb[12].mxu1 }
 0x433   : > { %v1189_v60 = vpop.f32.mrb[13].mxu1 }
 0x434   : > { %1300 = vxpose.xlu0.b32.cont [13/16] (narrow) %v1189_v60, 8 }
 0x438   : > { %1301 = vxpose.xlu0.b32.cont [14/16] (narrow) %v1766_v59, 8 }
 0x43a   : > { %v1769_v61 = vpop.f32.mrb[14].mxu1 }
 0x43b   : > { %v1199_v62 = vpop.f32.mrb[15].mxu1 }
 0x43c   : > { %1302 = vxpose.xlu0.b32.cont [15/16] (narrow) %v1199_v62, 8 }
 0x440   : > { %1303 = vxpose.xlu0.b32.end [16/16] (narrow) %v1769_v61, 8 }
 0x442   : > { %v1772_v63 = vpop.f32.mrb[16].mxu1 }
 0x443   : > { %v1209_v1 = vpop.f32.mrb[17].mxu1 }
 0x444   : > { %1320 = vxpose.xlu0.b32.start [1/16] (narrow) %v1209_v1, 8 }
 0x448   : > { %1321 = vxpose.xlu0.b32.cont [2/16] (narrow) %v1772_v63, 8 }
 0x44a   : > { %v1775_v2 = vpop.f32.mrb[18].mxu1 }
 0x44b   : > { %v1219_v3 = vpop.f32.mrb[19].mxu1 }
 0x44c   : > { %1322 = vxpose.xlu0.b32.cont [3/16] (narrow) %v1219_v3, 8 }
 0x450   : > { %1323 = vxpose.xlu0.b32.cont [4/16] (narrow) %v1775_v2, 8 }
 0x452   : > { %v1778_v4 = vpop.f32.mrb[20].mxu1 }
 0x453   : > { %v1229_v5 = vpop.f32.mrb[21].mxu1 }
 0x454   : > { %1324 = vxpose.xlu0.b32.cont [5/16] (narrow) %v1229_v5, 8 }
 0x458   : > { %1325 = vxpose.xlu0.b32.cont [6/16] (narrow) %v1778_v4, 8 }
 0x45a   : > { %v1781_v6 = vpop.f32.mrb[22].mxu1 }
 0x45b   : > { %v1239_v7 = vpop.f32.mrb[23].mxu1 }
 0x45c   : > { %1326 = vxpose.xlu0.b32.cont [7/16] (narrow) %v1239_v7, 8 }
 0x460   : > { %1327 = vxpose.xlu0.b32.cont [8/16] (narrow) %v1781_v6, 8 }
 0x462   : > { %v1784_v8 = vpop.f32.mrb[24].mxu1 }
 0x463   : > { %v1249_v10 = vpop.f32.mrb[25].mxu1 }
 0x464   : > { %1328 = vxpose.xlu0.b32.cont [9/16] (narrow) %v1249_v10, 8 }
 0x468   : > { %1329 = vxpose.xlu0.b32.cont [10/16] (narrow) %v1784_v8, 8 }
 0x46a   : > { %v1787_v11 = vpop.f32.mrb[26].mxu1 }
 0x46b   : > { %v1259_v12 = vpop.f32.mrb[27].mxu1 }
 0x46c   : > { %1330 = vxpose.xlu0.b32.cont [11/16] (narrow) %v1259_v12, 8 }
 0x470   : > { %1331 = vxpose.xlu0.b32.cont [12/16] (narrow) %v1787_v11, 8 }
 0x472   : > { %v1790_v13 = vpop.f32.mrb[28].mxu1 }
 0x473   : > { %v1269_v14 = vpop.f32.mrb[29].mxu1 }
 0x474   : > { %1332 = vxpose.xlu0.b32.cont [13/16] (narrow) %v1269_v14, 8 }
 0x478   : > { %1333 = vxpose.xlu0.b32.cont [14/16] (narrow) %v1790_v13, 8 }
 0x47a   : > { %v1793_v15 = vpop.f32.mrb[30].mxu1 }
 0x47b   : > { %v1279_v16 = vpop.f32.mrb[31].mxu1 }
 0x47c   : > { %1334 = vxpose.xlu0.b32.cont [15/16] (narrow) %v1279_v16, 8 }
 0x480   : > { %1335 = vxpose.xlu0.b32.end [16/16] (narrow) %v1793_v15, 8 }
 0x484   : > { %v1304_v17 = vpop.trf.xlu0 }
 0x485   : > { %v1358_v19 = vadd.f32 %v1356_v18, %v1304_v17 }
 0x487   : > { %v1363_v25 = vmul.f32 %v1362_v21, %v1358_v19 }
 0x4a9   : > { %1924 = vset.pattern.permute.xlu0 %v2201_v9 }
 0x4c4   : > { %v1336_v22 = vpop.trf.xlu0 }
 0x4c5   : > { %v1359_v23 = vadd.f32 %v1356_v18, %v1336_v22 }
 0x4c7   : > { %v1364_v26 = vmul.f32 %v1362_v21, %v1359_v23 }
 0x4c9   : > { %v1367_v9 = vcombine.low %v1363_v25, %v1364_v26 }
 0x4cb   : > { %v1369_v27 = vadd.f32 %v1367_v9, %v1361_v24 }
 0x4cd   : > { %1370 = vst [vmem:[%s351_s8] sm:$0xff] %v1369_v27 }
 0x4ce   : > { %2110 = shalt.err (!%p2107_p8)
}
 0x4cf   : > { %s2111_s0 = scalar_lea.hbm %s2587_s14, 128  ;;  %s2115_s30 = scalar_lea.hbm %s2642_s6, 256 }
 0x4d0   : > { %p2112_p1 = scmp.ne.s32.totalorder %s2587_s14, %s2111_s0  ;;  %p2116_p4 = scmp.lt.u32.totalorder %s2587_s14, %s2642_s6 }
 0x4d1   : > { %p2117_p5 = scmp.lt.u32.totalorder %s2115_s30, %s2111_s0  ;;  %p2119_p6 = scmp.lt.u32.totalorder %s2111_s0, %s2587_s14 }
 0x4d2   : > { %p2113_p7 = pnand %p2112_p1, %p2665_p12 }
 0x4d3   : > { %p2118_p3 = por %p2117_p5, %p2116_p4 }
 0x4d4   : > { %p2114_p9 = pneg %p2113_p7 }
 0x4d5   : > { %p2120_p0 = por %p2119_p6, %p2118_p3 }
 0x4d7   : > { %p2121_p2 = pnand %p2120_p0, %p2114_p9 }
 0x4d9   : > { %2124 = shalt.err (!%p2121_p2)
}
 0x4da   : > { %1828 = dma.vmem_to_hbm [thread:$0]  (%p2665_p12), %s2589_s11, 128, %s2587_s14, %s1372_s16  }
 0x4db PF: > { %s1400_s8 = sand.u32 1, %s2171_s21   ;;  %p2666_p10 = scmp.ne.s32.totalorder %s2661_s18, 0 }
 0x4dc   : > { %p2667_p11 = scmp.ge.s32.totalorder %s2191_s26, 2  ;;  %s1401_s20 = scalar_lea.sflag [#allocation4], %s1400_s8 }
 0x4de   : > { %p1851_p13 = pnand %p2667_p11, %p2666_p10 }
 0x4e0   : > { %2166 = dma.done.wait (!%p1851_p13), %s1401_s20, 128  }
 0x4e1   : > { %2168 = vsyncadd (!%p1851_p13), %s1401_s20, 4294967168  ;;  %s25_s26 = sadd.s32 1, %s2191_s26   ;;  %s2668_s21 = smov %s2175_s22 }
 0x4e2   : > { %p22_p8 = scmp.ge.s32.totalorder %s25_s26, 4   ;;  %s2669_s22 = smov %s2179_s23 }
 0x4e3   : > { %s2670_s23 = smov %s2434_s17  ;;  %s2671_s24 = smov %s2187_s25 }
 0x4e4   : > { %s2672_s25 = smov %s2674_s29  ;;  %24 = sbr.rel (!%p22_p8) target bundleno = 11 (0xb), region = 110 }
 0x4eb   :  { %1406 = vsyncpa [#allocation3], 1 }
 0x4ec   :  { %1408 = vsyncpa [#allocation3 + $0x1], 1 }
 0x4ed   :  { %1409 = vsyncpa [#allocation8], 1 }
 0x4ee   :  { %1410 = vsyncpa [#allocation11], 1 }
 0x4ef   :  { %1411 = vsyncpa [#allocation4], 1 }
 0x4f0   :  { %1413 = vsyncpa [#allocation4 + $0x1], 1 }
 0x4f1   :  { %1414 = vsyncpa [#allocation5], 1 }
 0x4f2   :  { %1416 = vsyncpa [#allocation5 + $0x1], 1 }

</bundles_post_ra>
